<compile_context>
chip_gen: v6e
topology: v6e:2x2x1
jax: 0.10.0
libtpu: 0.0.40
codegen_flags: <defaults>
</compile_context>

<pallas_src>
import numpy as np
import jax
import jax.numpy as jnp
from jax import lax
from jax.experimental import pallas as pl
from jax.experimental.pallas import tpu as pltpu

KSIZE = 3          # args.kernel_size
BN_EPS = 1e-5      # nn.BatchNorm2d default


# --------------------------------------------------------------------------
# Kernel A: Conv3x3(s2,p1) + BN(train) + ReLU + Conv1x1 + BN(train)  (MXU)
# --------------------------------------------------------------------------
def _stem_kernel(cols_ref, w1_ref, g1_ref, b1_ref, w2_ref, g2_ref, b2_ref,
                 out_ref):
    """All contractions on the MXU; activations kept as (C, B*Ho*Wo).

    cols_ref : (9*Cin, M)  im2col patches, M = B*Ho*Wo  (lane-dense)
    w1_ref   : (Cstem, 9*Cin)        w2_ref : (nC, Cstem)
    g*/b*    : (C, 1) BN affine params
    out_ref  : (B, nC, Ho*Wo)
    """
    x = jnp.dot(w1_ref[...], cols_ref[...],
                preferred_element_type=jnp.float32)              # (Cstem, M)

    def bn_train(t, gamma, beta):
        # training-mode BN: biased batch statistics, single pass over the data
        m = jnp.mean(t, axis=1, keepdims=True)                   # (C, 1)
        v = jnp.mean(t * t, axis=1, keepdims=True) - m * m       # E[x^2]-m^2
        return (t - m) * lax.rsqrt(v + BN_EPS) * gamma + beta

    y = jnp.maximum(bn_train(x, g1_ref[...], b1_ref[...]), 0.0)  # ReLU
    z = jnp.dot(w2_ref[...], y,
                preferred_element_type=jnp.float32)              # (nC, M)
    z = bn_train(z, g2_ref[...], b2_ref[...])                    # no activation

    # de-interleave batch out of the lane axis: (nC, B*HoWo) -> (B, nC, HoWo)
    n_batch, _, hw = out_ref.shape
    for b in range(n_batch):                                     # static unroll
        out_ref[b] = z[:, b * hw:(b + 1) * hw]


# --------------------------------------------------------------------------
# Kernel B: bilinear x2 upsample (align_corners=False), batched slabs
# --------------------------------------------------------------------------
def _upsample_kernel(y_ref, uh_ref, uwt_ref, o_ref):
    """Upsample TILE (Ho, Wo) slabs per grid step as two MXU matmuls each."""
    uh, uwt = uh_ref[...], uwt_ref[...]
    for k in range(y_ref.shape[0]):                              # static unroll
        t = jnp.dot(uh, y_ref[k], preferred_element_type=jnp.float32)   # (2Ho, Wo)
        o_ref[k] = jnp.dot(t, uwt, preferred_element_type=jnp.float32)  # (2Ho, 2Wo)


def _bilinear_matrix(n_out, n_in):
    """Interpolation matrix matching torch Upsample(scale=2, bilinear,
    align_corners=False) along one axis."""
    U = np.zeros((n_out, n_in), np.float32)
    for o in range(n_out):
        s = (o + 0.5) / 2.0 - 0.5
        i0 = int(np.floor(s))
        f = s - i0
        U[o, min(max(i0, 0), n_in - 1)] += 1.0 - f
        U[o, min(max(i0 + 1, 0), n_in - 1)] += f
    return U


def _full_spec(shape):
    nd = len(shape)
    return pl.BlockSpec(shape, lambda i, _nd=nd: (0,) * _nd)


def _upsample_tile(bc):
    """Largest slab-count per grid step that still leaves >=2 grid steps."""
    for t in (8, 4, 2, 1):
        if bc % t == 0 and bc // t >= 2:
            return t
    return bc


# --------------------------------------------------------------------------
# Wrapper: Network.forward
# --------------------------------------------------------------------------
def network_forward(x_nchw, params):
    W1, g1, b1, W2, g2, b2 = (params[k] for k in
                              ("W1", "g1", "b1", "W2", "g2", "b2"))
    B, Cin, H, W = x_nchw.shape
    Cstem, nC = W1.shape[0], W2.shape[0]
    pad = KSIZE // 2
    Ho = (H + 2 * pad - KSIZE) // 2 + 1
    Wo = (W + 2 * pad - KSIZE) // 2 + 1
    M = B * Ho * Wo

    # ---- layout glue (XLA): im2col so the conv contraction is one MXU matmul
    x = x_nchw.astype(jnp.float32)
    xp = jnp.pad(x, ((0, 0), (0, 0), (pad, pad), (pad, pad)))
    taps = []
    for kh in range(KSIZE):
        for kw in range(KSIZE):
            taps.append(xp[:, :, kh:kh + 2 * (Ho - 1) + 1:2,
                               kw:kw + 2 * (Wo - 1) + 1:2])       # (B,Cin,Ho,Wo)
    patches = jnp.stack(taps, axis=2)                             # (B,Cin,9,Ho,Wo)
    cols = patches.transpose(1, 2, 0, 3, 4).reshape(Cin * KSIZE * KSIZE, M)

    w1k = W1.reshape(Cstem, Cin * KSIZE * KSIZE).astype(jnp.float32)
    w2k = W2[:, :, 0, 0].astype(jnp.float32)
    g1k, b1k = g1.reshape(Cstem, 1), b1.reshape(Cstem, 1)
    g2k, b2k = g2.reshape(nC, 1), b2.reshape(nC, 1)

    ins = [cols, w1k, g1k, b1k, w2k, g2k, b2k]
    # TODO(synk): for production-sized H,W, tile this kernel over the M axis
    # with sum / sum-of-squares accumulators (two-phase BN) so it fits v7x's
    # 64 MiB VMEM and gains a parallel grid axis; at test shapes one block is
    # both correct and fastest.
    y_conv = pl.pallas_call(
        _stem_kernel,
        out_shape=jax.ShapeDtypeStruct((B, nC, Ho * Wo), jnp.float32),
        grid=(1,),
        in_specs=[_full_spec(a.shape) for a in ins],
        out_specs=_full_spec((B, nC, Ho * Wo)),
        compiler_params=pltpu.CompilerParams(
            dimension_semantics=("arbitrary",)),
    )(*ins)

    if (B, nC, Ho, Wo) == tuple(x_nchw.shape):                    # mirrors torch check
        return y_conv.reshape(B, nC, Ho, Wo)

    # ---- bilinear x2 upsample: batched slabs, parallel grid ----------------
    BC = B * nC
    tile = _upsample_tile(BC)
    Uh = jnp.asarray(_bilinear_matrix(2 * Ho, Ho))                # (2Ho, Ho)
    UwT = jnp.asarray(_bilinear_matrix(2 * Wo, Wo)).T             # (Wo, 2Wo)
    y_fl = y_conv.reshape(BC, Ho, Wo)                             # pure reshape
    out = pl.pallas_call(
        _upsample_kernel,
        out_shape=jax.ShapeDtypeStruct((BC, 2 * Ho, 2 * Wo), jnp.float32),
        grid=(BC // tile,),
        in_specs=[pl.BlockSpec((tile, Ho, Wo), lambda i: (i, 0, 0)),
                  pl.BlockSpec((2 * Ho, Ho), lambda i: (0, 0)),
                  pl.BlockSpec((Wo, 2 * Wo), lambda i: (0, 0))],
        out_specs=pl.BlockSpec((tile, 2 * Ho, 2 * Wo), lambda i: (i, 0, 0)),
        compiler_params=pltpu.CompilerParams(
            dimension_semantics=("parallel",)),
    )(y_fl, Uh, UwT)
    return out.reshape(B, nC, 2 * Ho, 2 * Wo)


# --------------------------------------------------------------------------
# Pure-JAX reference (ground truth for validating the Pallas kernels)
# --------------------------------------------------------------------------
def reference_forward(x_nchw, params):
    W1, g1, b1, W2, g2, b2 = (params[k] for k in
                              ("W1", "g1", "b1", "W2", "g2", "b2"))
    x = jnp.transpose(x_nchw, (0, 2, 3, 1)).astype(jnp.float32)
    w1_hwio = jnp.transpose(W1, (2, 3, 1, 0))
    y = lax.conv_general_dilated(
        x, w1_hwio, (2, 2), ((1, 1), (1, 1)),
        dimension_numbers=("NHWC", "HWIO", "NHWC"),
        precision=lax.Precision.HIGHEST)

    def bn(t, gamma, beta):
        m = jnp.mean(t, axis=(0, 1, 2), keepdims=True)
        v = jnp.mean((t - m) ** 2, axis=(0, 1, 2), keepdims=True)
        return (t - m) / jnp.sqrt(v + BN_EPS) * gamma + beta

    y = jnp.maximum(bn(y, g1, b1), 0.0)
    y = jnp.einsum("bhwc,oc->bhwo", y, W2[:, :, 0, 0],
                   precision=lax.Precision.HIGHEST)
    y = bn(y, g2, b2)
    y = jnp.transpose(y, (0, 3, 1, 2))
    if y.shape == x_nchw.shape:
        return y
    Ho, Wo = y.shape[2], y.shape[3]
    Uh = jnp.asarray(_bilinear_matrix(2 * Ho, Ho))
    Uw = jnp.asarray(_bilinear_matrix(2 * Wo, Wo))
    y = jnp.einsum("ph,bchw->bcpw", Uh, y, precision=lax.Precision.HIGHEST)
    y = jnp.einsum("qw,bcpw->bcpq", Uw, y, precision=lax.Precision.HIGHEST)
    return y


if __name__ == "__main__":
    # args: stem_channels=8, kernel_size=3, encoder_layers=decoder_layers=2,
    #       num_of_classes=4, activation='relu'  (encoder/decoder are identity).
    B, H, W = 2, 16, 16
    Cin, Cstem, nC = 3, 8, 4

    key = jax.random.PRNGKey(0)
    ks = jax.random.split(key, 7)
    params = dict(
        W1=0.3 * jax.random.normal(ks[0], (Cstem, Cin, KSIZE, KSIZE), jnp.float32),
        g1=1.0 + 0.1 * jax.random.normal(ks[1], (Cstem,), jnp.float32),
        b1=0.1 * jax.random.normal(ks[2], (Cstem,), jnp.float32),
        W2=0.3 * jax.random.normal(ks[3], (nC, Cstem, 1, 1), jnp.float32),
        g2=1.0 + 0.1 * jax.random.normal(ks[4], (nC,), jnp.float32),
        b2=0.1 * jax.random.normal(ks[5], (nC,), jnp.float32),
    )
    x = jax.random.normal(ks[6], (B, Cin, H, W), jnp.float32)

    out = jax.block_until_ready(jax.jit(network_forward)(x, params))
    ref = jax.block_until_ready(reference_forward(x, params))

    assert out.shape == (B, nC, H, W), out.shape
    np.testing.assert_allclose(np.asarray(out), np.asarray(ref),
                               rtol=2e-2, atol=2e-2)
    print("KERNEL_OK")
</pallas_src>

<mosaic_0001>
module attributes {stable_mosaic.version = 11 : i64} {
  func.func @_stem_kernel(%arg0: i32, %arg1: memref<27x128xf32, #tpu.memory_space<vmem>>, %arg2: memref<8x27xf32, #tpu.memory_space<vmem>>, %arg3: memref<8x1xf32, #tpu.memory_space<vmem>>, %arg4: memref<8x1xf32, #tpu.memory_space<vmem>>, %arg5: memref<4x8xf32, #tpu.memory_space<vmem>>, %arg6: memref<4x1xf32, #tpu.memory_space<vmem>>, %arg7: memref<4x1xf32, #tpu.memory_space<vmem>>, %arg8: memref<2x4x64xf32, #tpu.memory_space<vmem>>) attributes {dimension_semantics = [#tpu.dimension_semantics<arbitrary>], iteration_bounds = array<i64: 1>, scalar_prefetch = 0 : i64, scratch_operands = 0 : i64, tpu.core_type = #tpu.core_type<tc>, window_params = [{pipeline_mode = #tpu.pipeline_mode<synchronous>, transform_indices = @transform_0, window_bounds = array<i64: 27, 128>}, {pipeline_mode = #tpu.pipeline_mode<synchronous>, transform_indices = @transform_1, window_bounds = array<i64: 8, 27>}, {pipeline_mode = #tpu.pipeline_mode<synchronous>, transform_indices = @transform_2, window_bounds = array<i64: 8, 1>}, {pipeline_mode = #tpu.pipeline_mode<synchronous>, transform_indices = @transform_3, window_bounds = array<i64: 8, 1>}, {pipeline_mode = #tpu.pipeline_mode<synchronous>, transform_indices = @transform_4, window_bounds = array<i64: 4, 8>}, {pipeline_mode = #tpu.pipeline_mode<synchronous>, transform_indices = @transform_5, window_bounds = array<i64: 4, 1>}, {pipeline_mode = #tpu.pipeline_mode<synchronous>, transform_indices = @transform_6, window_bounds = array<i64: 4, 1>}, {pipeline_mode = #tpu.pipeline_mode<synchronous>, transform_indices = @transform_7, window_bounds = array<i64: 2, 4, 64>}]} {
    %c0 = arith.constant 0 : index
    %c0_0 = arith.constant 0 : index
    %0 = vector.load %arg2[%c0, %c0_0] : memref<8x27xf32, #tpu.memory_space<vmem>>, vector<8x27xf32>
    %c0_1 = arith.constant 0 : index
    %c0_2 = arith.constant 0 : index
    %1 = vector.load %arg1[%c0_1, %c0_2] : memref<27x128xf32, #tpu.memory_space<vmem>>, vector<27x128xf32>
    %cst = arith.constant dense<0.000000e+00> : vector<8x128xf32>
    %2 = tpu.matmul %0, %1, %cst {dimension_numbers = #tpu.dot_dimension_numbers<[1], [0], [0], [1], [0, 0, 1, 1], [], []>} : vector<8x27xf32>, vector<27x128xf32>, vector<8x128xf32> -> vector<8x128xf32>
    %c0_3 = arith.constant 0 : index
    %c0_4 = arith.constant 0 : index
    %3 = vector.load %arg3[%c0_3, %c0_4] : memref<8x1xf32, #tpu.memory_space<vmem>>, vector<8x1xf32>
    %c0_5 = arith.constant 0 : index
    %c0_6 = arith.constant 0 : index
    %4 = vector.load %arg4[%c0_5, %c0_6] : memref<8x1xf32, #tpu.memory_space<vmem>>, vector<8x1xf32>
    %cst_7 = arith.constant dense<0.000000e+00> : vector<8xf32>
    %5 = vector.multi_reduction <add>, %2, %cst_7 [1] : vector<8x128xf32> to vector<8xf32>
    %6 = vector.shape_cast %5 : vector<8xf32> to vector<8x1xf32>
    %cst_8 = arith.constant 1.280000e+02 : f32
    %7 = vector.broadcast %cst_8 : f32 to vector<8x1xf32>
    %8 = arith.divf %6, %7 : vector<8x1xf32>
    %9 = arith.mulf %2, %2 : vector<8x128xf32>
    %cst_9 = arith.constant dense<0.000000e+00> : vector<8xf32>
    %10 = vector.multi_reduction <add>, %9, %cst_9 [1] : vector<8x128xf32> to vector<8xf32>
    %11 = vector.shape_cast %10 : vector<8xf32> to vector<8x1xf32>
    %cst_10 = arith.constant 1.280000e+02 : f32
    %12 = vector.broadcast %cst_10 : f32 to vector<8x1xf32>
    %13 = arith.divf %11, %12 : vector<8x1xf32>
    %14 = arith.mulf %8, %8 : vector<8x1xf32>
    %15 = arith.subf %13, %14 : vector<8x1xf32>
    %16 = vector.broadcast %8 : vector<8x1xf32> to vector<8x128xf32>
    %17 = arith.subf %2, %16 : vector<8x128xf32>
    %cst_11 = arith.constant 9.99999974E-6 : f32
    %18 = vector.broadcast %cst_11 : f32 to vector<8x1xf32>
    %19 = arith.addf %15, %18 : vector<8x1xf32>
    %20 = math.rsqrt %19 : vector<8x1xf32>
    %21 = vector.broadcast %20 : vector<8x1xf32> to vector<8x128xf32>
    %22 = arith.mulf %17, %21 : vector<8x128xf32>
    %23 = vector.broadcast %3 : vector<8x1xf32> to vector<8x128xf32>
    %24 = arith.mulf %22, %23 : vector<8x128xf32>
    %25 = vector.broadcast %4 : vector<8x1xf32> to vector<8x128xf32>
    %26 = arith.addf %24, %25 : vector<8x128xf32>
    %cst_12 = arith.constant 0.000000e+00 : f32
    %27 = vector.broadcast %cst_12 : f32 to vector<8x128xf32>
    %28 = arith.maximumf %26, %27 : vector<8x128xf32>
    %c0_13 = arith.constant 0 : index
    %c0_14 = arith.constant 0 : index
    %29 = vector.load %arg5[%c0_13, %c0_14] : memref<4x8xf32, #tpu.memory_space<vmem>>, vector<4x8xf32>
    %cst_15 = arith.constant dense<0.000000e+00> : vector<4x128xf32>
    %30 = tpu.matmul %29, %28, %cst_15 {dimension_numbers = #tpu.dot_dimension_numbers<[1], [0], [0], [1], [0, 0, 1, 1], [], []>} : vector<4x8xf32>, vector<8x128xf32>, vector<4x128xf32> -> vector<4x128xf32>
    %c0_16 = arith.constant 0 : index
    %c0_17 = arith.constant 0 : index
    %31 = vector.load %arg6[%c0_16, %c0_17] : memref<4x1xf32, #tpu.memory_space<vmem>>, vector<4x1xf32>
    %c0_18 = arith.constant 0 : index
    %c0_19 = arith.constant 0 : index
    %32 = vector.load %arg7[%c0_18, %c0_19] : memref<4x1xf32, #tpu.memory_space<vmem>>, vector<4x1xf32>
    %cst_20 = arith.constant dense<0.000000e+00> : vector<4xf32>
    %33 = vector.multi_reduction <add>, %30, %cst_20 [1] : vector<4x128xf32> to vector<4xf32>
    %34 = vector.shape_cast %33 : vector<4xf32> to vector<4x1xf32>
    %cst_21 = arith.constant 1.280000e+02 : f32
    %35 = vector.broadcast %cst_21 : f32 to vector<4x1xf32>
    %36 = arith.divf %34, %35 : vector<4x1xf32>
    %37 = arith.mulf %30, %30 : vector<4x128xf32>
    %cst_22 = arith.constant dense<0.000000e+00> : vector<4xf32>
    %38 = vector.multi_reduction <add>, %37, %cst_22 [1] : vector<4x128xf32> to vector<4xf32>
    %39 = vector.shape_cast %38 : vector<4xf32> to vector<4x1xf32>
    %cst_23 = arith.constant 1.280000e+02 : f32
    %40 = vector.broadcast %cst_23 : f32 to vector<4x1xf32>
    %41 = arith.divf %39, %40 : vector<4x1xf32>
    %42 = arith.mulf %36, %36 : vector<4x1xf32>
    %43 = arith.subf %41, %42 : vector<4x1xf32>
    %44 = vector.broadcast %36 : vector<4x1xf32> to vector<4x128xf32>
    %45 = arith.subf %30, %44 : vector<4x128xf32>
    %cst_24 = arith.constant 9.99999974E-6 : f32
    %46 = vector.broadcast %cst_24 : f32 to vector<4x1xf32>
    %47 = arith.addf %43, %46 : vector<4x1xf32>
    %48 = math.rsqrt %47 : vector<4x1xf32>
    %49 = vector.broadcast %48 : vector<4x1xf32> to vector<4x128xf32>
    %50 = arith.mulf %45, %49 : vector<4x128xf32>
    %51 = vector.broadcast %31 : vector<4x1xf32> to vector<4x128xf32>
    %52 = arith.mulf %50, %51 : vector<4x128xf32>
    %53 = vector.broadcast %32 : vector<4x1xf32> to vector<4x128xf32>
    %54 = arith.addf %52, %53 : vector<4x128xf32>
    %55 = vector.extract_strided_slice %54 {offsets = [0, 0], sizes = [4, 64], strides = [1, 1]} : vector<4x128xf32> to vector<4x64xf32>
    %c0_25 = arith.constant 0 : index
    %c0_26 = arith.constant 0 : index
    %c0_27 = arith.constant 0 : index
    %56 = vector.load %arg8[%c0_25, %c0_26, %c0_27] : memref<2x4x64xf32, #tpu.memory_space<vmem>>, vector<1x4x64xf32>
    %57 = vector.shape_cast %56 : vector<1x4x64xf32> to vector<4x64xf32>
    %58 = vector.shape_cast %55 : vector<4x64xf32> to vector<1x4x64xf32>
    tpu.vector_store %arg8[%c0_25, %c0_26, %c0_27], %58 {strides = array<i32>} : memref<2x4x64xf32, #tpu.memory_space<vmem>>, vector<1x4x64xf32>,
    %59 = vector.extract_strided_slice %54 {offsets = [0, 64], sizes = [4, 64], strides = [1, 1]} : vector<4x128xf32> to vector<4x64xf32>
    %c1 = arith.constant 1 : index
    %c0_28 = arith.constant 0 : index
    %c0_29 = arith.constant 0 : index
    %60 = vector.load %arg8[%c1, %c0_28, %c0_29] : memref<2x4x64xf32, #tpu.memory_space<vmem>>, vector<1x4x64xf32>
    %61 = vector.shape_cast %60 : vector<1x4x64xf32> to vector<4x64xf32>
    %62 = vector.shape_cast %59 : vector<4x64xf32> to vector<1x4x64xf32>
    tpu.vector_store %arg8[%c1, %c0_28, %c0_29], %62 {strides = array<i32>} : memref<2x4x64xf32, #tpu.memory_space<vmem>>, vector<1x4x64xf32>,
    return
  }
  func.func @transform_0(%arg0: i32) -> (i32, i32) {
    %c0_i32 = arith.constant 0 : i32
    %c0_i32_0 = arith.constant 0 : i32
    %c0_i32_1 = arith.constant 0 : i32
    return %c0_i32, %c0_i32_0 : i32, i32
  }
  func.func @transform_1(%arg0: i32) -> (i32, i32) {
    %c0_i32 = arith.constant 0 : i32
    %c0_i32_0 = arith.constant 0 : i32
    %c0_i32_1 = arith.constant 0 : i32
    return %c0_i32, %c0_i32_0 : i32, i32
  }
  func.func @transform_2(%arg0: i32) -> (i32, i32) {
    %c0_i32 = arith.constant 0 : i32
    %c0_i32_0 = arith.constant 0 : i32
    %c0_i32_1 = arith.constant 0 : i32
    return %c0_i32, %c0_i32_0 : i32, i32
  }
  func.func @transform_3(%arg0: i32) -> (i32, i32) {
    %c0_i32 = arith.constant 0 : i32
    %c0_i32_0 = arith.constant 0 : i32
    %c0_i32_1 = arith.constant 0 : i32
    return %c0_i32, %c0_i32_0 : i32, i32
  }
  func.func @transform_4(%arg0: i32) -> (i32, i32) {
    %c0_i32 = arith.constant 0 : i32
    %c0_i32_0 = arith.constant 0 : i32
    %c0_i32_1 = arith.constant 0 : i32
    return %c0_i32, %c0_i32_0 : i32, i32
  }
  func.func @transform_5(%arg0: i32) -> (i32, i32) {
    %c0_i32 = arith.constant 0 : i32
    %c0_i32_0 = arith.constant 0 : i32
    %c0_i32_1 = arith.constant 0 : i32
    return %c0_i32, %c0_i32_0 : i32, i32
  }
  func.func @transform_6(%arg0: i32) -> (i32, i32) {
    %c0_i32 = arith.constant 0 : i32
    %c0_i32_0 = arith.constant 0 : i32
    %c0_i32_1 = arith.constant 0 : i32
    return %c0_i32, %c0_i32_0 : i32, i32
  }
  func.func @transform_7(%arg0: i32) -> (i32, i32, i32) {
    %c0_i32 = arith.constant 0 : i32
    %c0_i32_0 = arith.constant 0 : i32
    %c0_i32_1 = arith.constant 0 : i32
    %c0_i32_2 = arith.constant 0 : i32
    return %c0_i32, %c0_i32_0, %c0_i32_1 : i32, i32, i32
  }
}

module attributes {stable_mosaic.version = 11 : i64} {
  func.func @_upsample_kernel(%arg0: i32, %arg1: memref<4x8x8xf32, #tpu.memory_space<vmem>>, %arg2: memref<16x8xf32, #tpu.memory_space<vmem>>, %arg3: memref<8x16xf32, #tpu.memory_space<vmem>>, %arg4: memref<4x16x16xf32, #tpu.memory_space<vmem>>) attributes {dimension_semantics = [#tpu.dimension_semantics<parallel>], iteration_bounds = array<i64: 2>, scalar_prefetch = 0 : i64, scratch_operands = 0 : i64, tpu.core_type = #tpu.core_type<tc>, window_params = [{transform_indices = @transform_0, window_bounds = array<i64: 4, 8, 8>}, {pipeline_mode = #tpu.pipeline_mode<synchronous>, transform_indices = @transform_1, window_bounds = array<i64: 16, 8>}, {pipeline_mode = #tpu.pipeline_mode<synchronous>, transform_indices = @transform_2, window_bounds = array<i64: 8, 16>}, {transform_indices = @transform_3, window_bounds = array<i64: 4, 16, 16>}]} {
    %c0 = arith.constant 0 : index
    %c0_0 = arith.constant 0 : index
    %0 = vector.load %arg2[%c0, %c0_0] : memref<16x8xf32, #tpu.memory_space<vmem>>, vector<16x8xf32>
    %c0_1 = arith.constant 0 : index
    %c0_2 = arith.constant 0 : index
    %1 = vector.load %arg3[%c0_1, %c0_2] : memref<8x16xf32, #tpu.memory_space<vmem>>, vector<8x16xf32>
    %c0_3 = arith.constant 0 : index
    %c0_4 = arith.constant 0 : index
    %c0_5 = arith.constant 0 : index
    %2 = vector.load %arg1[%c0_3, %c0_4, %c0_5] : memref<4x8x8xf32, #tpu.memory_space<vmem>>, vector<1x8x8xf32>
    %3 = vector.shape_cast %2 : vector<1x8x8xf32> to vector<8x8xf32>
    %cst = arith.constant dense<0.000000e+00> : vector<16x8xf32>
    %4 = tpu.matmul %0, %3, %cst {dimension_numbers = #tpu.dot_dimension_numbers<[1], [0], [0], [1], [0, 0, 1, 1], [], []>} : vector<16x8xf32>, vector<8x8xf32>, vector<16x8xf32> -> vector<16x8xf32>
    %cst_6 = arith.constant dense<0.000000e+00> : vector<16x16xf32>
    %5 = tpu.matmul %4, %1, %cst_6 {dimension_numbers = #tpu.dot_dimension_numbers<[1], [0], [0], [1], [0, 0, 1, 1], [], []>} : vector<16x8xf32>, vector<8x16xf32>, vector<16x16xf32> -> vector<16x16xf32>
    %c0_7 = arith.constant 0 : index
    %c0_8 = arith.constant 0 : index
    %c0_9 = arith.constant 0 : index
    %6 = vector.load %arg4[%c0_7, %c0_8, %c0_9] : memref<4x16x16xf32, #tpu.memory_space<vmem>>, vector<1x16x16xf32>
    %7 = vector.shape_cast %6 : vector<1x16x16xf32> to vector<16x16xf32>
    %8 = vector.shape_cast %5 : vector<16x16xf32> to vector<1x16x16xf32>
    tpu.vector_store %arg4[%c0_7, %c0_8, %c0_9], %8 {strides = array<i32>} : memref<4x16x16xf32, #tpu.memory_space<vmem>>, vector<1x16x16xf32>,
    %c1 = arith.constant 1 : index
    %c0_10 = arith.constant 0 : index
    %c0_11 = arith.constant 0 : index
    %9 = vector.load %arg1[%c1, %c0_10, %c0_11] : memref<4x8x8xf32, #tpu.memory_space<vmem>>, vector<1x8x8xf32>
    %10 = vector.shape_cast %9 : vector<1x8x8xf32> to vector<8x8xf32>
    %cst_12 = arith.constant dense<0.000000e+00> : vector<16x8xf32>
    %11 = tpu.matmul %0, %10, %cst_12 {dimension_numbers = #tpu.dot_dimension_numbers<[1], [0], [0], [1], [0, 0, 1, 1], [], []>} : vector<16x8xf32>, vector<8x8xf32>, vector<16x8xf32> -> vector<16x8xf32>
    %cst_13 = arith.constant dense<0.000000e+00> : vector<16x16xf32>
    %12 = tpu.matmul %11, %1, %cst_13 {dimension_numbers = #tpu.dot_dimension_numbers<[1], [0], [0], [1], [0, 0, 1, 1], [], []>} : vector<16x8xf32>, vector<8x16xf32>, vector<16x16xf32> -> vector<16x16xf32>
    %c1_14 = arith.constant 1 : index
    %c0_15 = arith.constant 0 : index
    %c0_16 = arith.constant 0 : index
    %13 = vector.load %arg4[%c1_14, %c0_15, %c0_16] : memref<4x16x16xf32, #tpu.memory_space<vmem>>, vector<1x16x16xf32>
    %14 = vector.shape_cast %13 : vector<1x16x16xf32> to vector<16x16xf32>
    %15 = vector.shape_cast %12 : vector<16x16xf32> to vector<1x16x16xf32>
    tpu.vector_store %arg4[%c1_14, %c0_15, %c0_16], %15 {strides = array<i32>} : memref<4x16x16xf32, #tpu.memory_space<vmem>>, vector<1x16x16xf32>,
    %c2 = arith.constant 2 : index
    %c0_17 = arith.constant 0 : index
    %c0_18 = arith.constant 0 : index
    %16 = vector.load %arg1[%c2, %c0_17, %c0_18] : memref<4x8x8xf32, #tpu.memory_space<vmem>>, vector<1x8x8xf32>
    %17 = vector.shape_cast %16 : vector<1x8x8xf32> to vector<8x8xf32>
    %cst_19 = arith.constant dense<0.000000e+00> : vector<16x8xf32>
    %18 = tpu.matmul %0, %17, %cst_19 {dimension_numbers = #tpu.dot_dimension_numbers<[1], [0], [0], [1], [0, 0, 1, 1], [], []>} : vector<16x8xf32>, vector<8x8xf32>, vector<16x8xf32> -> vector<16x8xf32>
    %cst_20 = arith.constant dense<0.000000e+00> : vector<16x16xf32>
    %19 = tpu.matmul %18, %1, %cst_20 {dimension_numbers = #tpu.dot_dimension_numbers<[1], [0], [0], [1], [0, 0, 1, 1], [], []>} : vector<16x8xf32>, vector<8x16xf32>, vector<16x16xf32> -> vector<16x16xf32>
    %c2_21 = arith.constant 2 : index
    %c0_22 = arith.constant 0 : index
    %c0_23 = arith.constant 0 : index
    %20 = vector.load %arg4[%c2_21, %c0_22, %c0_23] : memref<4x16x16xf32, #tpu.memory_space<vmem>>, vector<1x16x16xf32>
    %21 = vector.shape_cast %20 : vector<1x16x16xf32> to vector<16x16xf32>
    %22 = vector.shape_cast %19 : vector<16x16xf32> to vector<1x16x16xf32>
    tpu.vector_store %arg4[%c2_21, %c0_22, %c0_23], %22 {strides = array<i32>} : memref<4x16x16xf32, #tpu.memory_space<vmem>>, vector<1x16x16xf32>,
    %c3 = arith.constant 3 : index
    %c0_24 = arith.constant 0 : index
    %c0_25 = arith.constant 0 : index
    %23 = vector.load %arg1[%c3, %c0_24, %c0_25] : memref<4x8x8xf32, #tpu.memory_space<vmem>>, vector<1x8x8xf32>
    %24 = vector.shape_cast %23 : vector<1x8x8xf32> to vector<8x8xf32>
    %cst_26 = arith.constant dense<0.000000e+00> : vector<16x8xf32>
    %25 = tpu.matmul %0, %24, %cst_26 {dimension_numbers = #tpu.dot_dimension_numbers<[1], [0], [0], [1], [0, 0, 1, 1], [], []>} : vector<16x8xf32>, vector<8x8xf32>, vector<16x8xf32> -> vector<16x8xf32>
    %cst_27 = arith.constant dense<0.000000e+00> : vector<16x16xf32>
    %26 = tpu.matmul %25, %1, %cst_27 {dimension_numbers = #tpu.dot_dimension_numbers<[1], [0], [0], [1], [0, 0, 1, 1], [], []>} : vector<16x8xf32>, vector<8x16xf32>, vector<16x16xf32> -> vector<16x16xf32>
    %c3_28 = arith.constant 3 : index
    %c0_29 = arith.constant 0 : index
    %c0_30 = arith.constant 0 : index
    %27 = vector.load %arg4[%c3_28, %c0_29, %c0_30] : memref<4x16x16xf32, #tpu.memory_space<vmem>>, vector<1x16x16xf32>
    %28 = vector.shape_cast %27 : vector<1x16x16xf32> to vector<16x16xf32>
    %29 = vector.shape_cast %26 : vector<16x16xf32> to vector<1x16x16xf32>
    tpu.vector_store %arg4[%c3_28, %c0_29, %c0_30], %29 {strides = array<i32>} : memref<4x16x16xf32, #tpu.memory_space<vmem>>, vector<1x16x16xf32>,
    return
  }
  func.func @transform_0(%arg0: i32) -> (i32, i32, i32) {
    %c0_i32 = arith.constant 0 : i32
    %c0_i32_0 = arith.constant 0 : i32
    %c0_i32_1 = arith.constant 0 : i32
    return %arg0, %c0_i32, %c0_i32_0 : i32, i32, i32
  }
  func.func @transform_1(%arg0: i32) -> (i32, i32) {
    %c0_i32 = arith.constant 0 : i32
    %c0_i32_0 = arith.constant 0 : i32
    %c0_i32_1 = arith.constant 0 : i32
    return %c0_i32, %c0_i32_0 : i32, i32
  }
  func.func @transform_2(%arg0: i32) -> (i32, i32) {
    %c0_i32 = arith.constant 0 : i32
    %c0_i32_0 = arith.constant 0 : i32
    %c0_i32_1 = arith.constant 0 : i32
    return %c0_i32, %c0_i32_0 : i32, i32
  }
  func.func @transform_3(%arg0: i32) -> (i32, i32, i32) {
    %c0_i32 = arith.constant 0 : i32
    %c0_i32_0 = arith.constant 0 : i32
    %c0_i32_1 = arith.constant 0 : i32
    return %arg0, %c0_i32, %c0_i32_0 : i32, i32, i32
  }
}

</mosaic_0001>

<bundles_post_ra>
// kernel: network_forward.2
= control target key start
LH: loop header
LB: loop body
LE: loop exit
PB: predicated region body
PF: predicated region fallthrough
CT: control target
= control target key end

     0   :  { %vm35_vm0 = vcmask 1042432   ;;  %v292_v0 = vmov 0.0   ;;  %vm293_vm1 = vmmov 0   ;;  %vm31_vm2 = vcmask 220160   ;;  %s372_s0 = inlined_call_operand.vmem [shape: f32[27,128], index: 0, kind: input, shape index: {}]   ;;  %s373_s1 = inlined_call_operand.vmem [shape: f32[8,27], index: 1, kind: input, shape index: {}]   ;;  %s374_s2 = inlined_call_operand.vmem [shape: f32[8,1], index: 2, kind: input, shape index: {}]   ;;  %s375_s3 = inlined_call_operand.vmem [shape: f32[8,1], index: 3, kind: input, shape index: {}]   ;;  %s376_s4 = inlined_call_operand.vmem [shape: f32[4,8], index: 4, kind: input, shape index: {}]   ;;  %s377_s6 = inlined_call_operand.vmem [shape: f32[4,1], index: 6, kind: input, shape index: {}]   ;;  %s378_s5 = inlined_call_operand.vmem [shape: f32[4,1], index: 5, kind: input, shape index: {}]   ;;  %s379_s7 = inlined_call_operand.vmem [shape: f32[2,4,64], index: 7, kind: output, shape index: {}]  }
   0x1   :  { %266 = vmatprep.subr.mxu0 %v292_v0  ;;  %v30_v1 = vld [vmem:[%s372_s0 + $0x18] sm:$0x7]  ;;  %v29_v2 = vld [vmem:[%s372_s0 + $0x10] sm:$0xff]  ;;  %274 = vmatprep.mubr.msk.f32.mxu0 %vm293_vm1, %v292_v0  ;;  %v28_v3 = vld [vmem:[%s372_s0 + $0x8] sm:$0xff]  ;;  %v294_v6 = vmov 0   ;;  %vm139_vm3 = vcmask 64512  }
   0x2   :  { %267 = vmatpush3.msk.msra.mxu0 %vm35_vm0, %v30_v1  ;;  %277 = vmatprep.subr.mxu1 %v292_v0  ;;  %v27_v4 = vld [vmem:[%s372_s0] sm:$0xff]  ;;  %vm215_vm4 = vcmask 1043456   ;;  %vm243_vm5 = vcmask 519168  }
   0x3   :  { %268 = vmatprep.subr.mxu0 %v292_v0  ;;  %279 = vmatprep.mubr.msk.f32.mxu1 %vm293_vm1, %v292_v0  ;;  %v26_v5 = vld [vmem:[%s373_s1] sm:$0xff] }
   0x4   :  { %269 = vmatpush3.msra.mxu0 %v29_v2  ;;  %286 = vset.pattern.permute.xlu1 %v294_v6  ;;  %v109_v7 = vld [vmem:[%s374_s2] sm:$0xff] }
   0x5   :  { %270 = vmatprep.subr.mxu0 %v292_v0  ;;  %287 = vset.pattern.permute.xlu0 %v294_v6  ;;  %v110_v8 = vld [vmem:[%s375_s3] sm:$0xff] }
   0x6   :  { %271 = vmatpush3.msra.mxu0 %v28_v3  ;;  %127 = vperm.xlu1 %286, %v109_v7   ;;  %v138_v27 = vld [vmem:[%s376_s4] sm:$0xf]  ;;  %s295_s4 = smov 64  }
   0x7   :  { %272 = vmatprep.subr.mxu0 %v292_v0  ;;  %v214_v33 = vld [vmem:[%s377_s6] sm:$0xf] }
   0x8   :  { %273 = vmatpush3.msra.mxu0 %v27_v4  ;;  %v213_v34 = vld [vmem:[%s378_s5] sm:$0xf] }
   0x9   :  { %275 = vmatmul.mubr.msk.f32.vlgmr.msra.gmra.mxu0 %vm31_vm2, %v26_v5 }
   0xa   :  { %133 = vperm.xlu1 %286, %v110_v8  }
  0x81   :  { %v128_v19 = vpop.permute.xlu1 %127 }
  0x85   :  { %v134_v24 = vpop.permute.xlu1 %133 }
  0xc9   :  { %v105_v9 = vpop.f32.mrf.mxu0 }
  0xca   :  { %111 = vadd.xlane.f32.xlu0 %v105_v9  ;;  %v115_v11 = vmul.f32 %v105_v9, %v105_v9 }
  0xcb   :  { %v276_v10 = vpop.f32.mrf.mxu0 }
  0xce   :  { %116 = vadd.xlane.f32.xlu0 %v115_v11 }
 0x153   :  { %v112_v12 = vpop.xlane.xlu0 %111 }
 0x154   :  { %v114_v13 = vmul.f32 0.0078125, %v112_v12 }
 0x156   :  { %v119_v15 = vmul.f32 %v114_v13, %v114_v13  ;;  %v121_v20 = vsub.f32 %v105_v9, %v114_v13 }
 0x157   :  { %v117_v14 = vpop.xlane.xlu0 %116 }
 0x158   :  { %v118_v16 = vmul.f32 0.0078125, %v117_v14 }
 0x15a   :  { %v120_v17 = vsub.f32 %v118_v16, %v119_v15 }
 0x15c   :  { %v122_v18 = vadd.f32 1e-05, %v120_v17 }
 0x15e   :  { %288 = vrsqrt.f32 %v122_v18 }
 0x16b   :  { %v289_v21 = vpop.eup %288 }
 0x16c   :  { %v124_v22 = vmul.f32 %v289_v21, %v121_v20 }
 0x16e   :  { %v130_v23 = vmul.f32 %v128_v19, %v124_v22 }
 0x170   :  { %v136_v25 = vadd.f32 %v134_v24, %v130_v23 }
 0x172   :  { %v137_v26 = vmax.f32 %v136_v25, 0.0 }
 0x174   :  { %278 = vmatpush3.msra.mxu1 %v137_v26 }
 0x175   :  { %280 = vmatmul.mubr.msk.f32.vlgmr.msra.gmra.mxu1 %vm139_vm3, %v138_v27 }
 0x235   :  { %v209_v28 = vpop.f32.mrf.mxu1 }
 0x236   :  { %v216_v29 = vsel %vm215_vm4, %v209_v28, 0.0  ;;  %v220_v30 = vmul.f32 %v209_v28, %v209_v28 }
 0x237   :  { %217 = vadd.xlane.f32.xlu0 %v216_v29  ;;  %v281_v31 = vpop.f32.mrf.mxu1 }
 0x238   :  { %v221_v32 = vsel %vm215_vm4, %v220_v30, 0.0 }
 0x239   :  { %222 = vadd.xlane.f32.xlu1 %v221_v32 }
 0x24a   :  { %239 = vperm.xlu1 %286, %v214_v33  }
 0x24d   :  { %233 = vperm.xlu0 %287, %v213_v34  }
 0x2c0   :  { %v218_v35 = vpop.xlane.xlu0 %217 }
 0x2c1   :  { %v219_v36 = vmul.f32 0.0078125, %v218_v35 }
 0x2c2   :  { %v223_v37 = vpop.xlane.xlu1 %222 }
 0x2c3   :  { %v225_v38 = vmul.f32 %v219_v36, %v219_v36  ;;  %v224_v39 = vmul.f32 0.0078125, %v223_v37  ;;  %v227_v42 = vsub.f32 %v209_v28, %v219_v36 }
 0x2c5   :  { %v226_v40 = vsub.f32 %v224_v39, %v225_v38 }
 0x2c6   :  { %v240_v47 = vpop.permute.xlu1 %239 }
 0x2c7   :  { %v228_v41 = vadd.f32 1e-05, %v226_v40 }
 0x2c8   :  { %v234_v44 = vpop.permute.xlu0 %233 }
 0x2c9   :  { %290 = vrsqrt.f32 %v228_v41 }
 0x2d6   :  { %v291_v43 = vpop.eup %290 }
 0x2d7   :  { %v230_v45 = vmul.f32 %v291_v43, %v227_v42 }
 0x2d9   :  { %v236_v46 = vmul.f32 %v234_v44, %v230_v45 }
 0x2db   :  { %v242_v48 = vadd.f32 %v240_v47, %v236_v46 }
 0x2dd   :  { %246 = vrot.lane.b32.xlu0 %v242_v48, %s295_s4  ;;  %244 = vst.msk [vmem:[%s379_s7] sm:$0xf] %vm243_vm5, %v242_v48 }
 0x34f   :  { %v247_v49 = vpop.permute.xlu0 %246 }
 0x350   :  { %258 = vst.msk [vmem:[%s379_s7 + $0x4] sm:$0xf] %vm243_vm5, %v247_v49 }

// kernel: network_forward.3
= control target key start
LH: loop header
LB: loop body
LE: loop exit
PB: predicated region body
PF: predicated region fallthrough
CT: control target
= control target key end

     0   :  { %8 = vsyncpa [#allocation3], 0  ;;  %s1266_s0 = inlined_call_operand.vmem [shape: f32[8,8,8], index: 0, kind: input, shape index: {}]   ;;  %s1267_s1 = inlined_call_operand.vmem [shape: f32[16,8], index: 1, kind: input, shape index: {}]   ;;  %s1268_s2 = inlined_call_operand.vmem [shape: f32[8,16], index: 2, kind: input, shape index: {}]   ;;  %s1269_s3 = inlined_call_operand.hbm [shape: f32[8,16,16], index: 3, kind: output, shape index: {}]  }
   0x1   :  { %10 = vsyncpa [#allocation3 + $0x1], 0  ;;  %s1132_s12 = smov 0   ;;  %s1134_s13 = smov 0  }
   0x2   :  { %s1136_s14 = smov 0   ;;  %s1138_s15 = smov 0  }
   0x3 LB: > { %s1153_s16 = sadd.s32 4294967295, %s1107_s15   ;;  %s902_s17 = sadd.s32 4294967294, %s1107_s15   ;;  %s1107_s15 = sphi %s1138_s15, %s1275_s15   ;;  %s1103_s14 = sphi %s1136_s14, %s1274_s14   ;;  %s1099_s13 = sphi %s1134_s13, %s1273_s13   ;;  %s1095_s12 = sphi %s1132_s12, %s1272_s12  }
   0x4   : > { %s1157_s18 = sadd.s32 1, %s1107_s15   ;;  %s91_s19 = sadd.s32 1, %s1103_s14 }
   0x5   : > { %s88_s20 = ssub.s32 %s1107_s15, %s1157_s18  ;;  %p101_p0 = scmp.ne.s32.totalorder %s1103_s14, %s1099_s13 }
   0x6   : > { %p89_p1 = scmp.eq.s32.totalorder %s88_s20, 0  ;;  %p102_p2 = scmp.eq.s32.totalorder %s1153_s16, 1 }
   0x7   : > { %p107_p3 = scmp.ne.s32.totalorder %s1099_s13, %s1095_s12  ;;  %p108_p4 = scmp.eq.s32.totalorder %s902_s17, 1 }
   0x8   : > { %s1168_s21 = scalar_select %p89_p1, %s1103_s14, %s91_s19  }
   0x9   : > { %p1170_p5 = por %p102_p2, %p101_p0  ;;  %p1174_p6 = por %p108_p4, %p107_p3 }
   0xa   : > { %p905_p7 = scmp.ge.s32.totalorder %s1107_s15, 1  ;;  %p141_p8 = scmp.lt.s32.totalorder %s1107_s15, 3 }
   0xc   : > { %p142_p9 = pnand %p905_p7, %p141_p8 }
   0xd   : > { %s907_s24 = sshll.u32 (!%p142_p9), %s1153_s16, 2  ;;  %s162_s8 = sand.u32 (!%p142_p9), 1, %s1099_s13  }
   0xe   : > { %145 = sbr.rel (%p142_p9) target bundleno = 442 (0x1ba), region = 32  ;;  %p166_p10 = scmp.lt.s32.totalorder (!%p142_p9), %s907_s24, 7 }
   0xf   : > { %s906_s9 = sshll.u32 (!%p142_p9), %s162_s8, 6  ;;  %s941_s11 = sshll.u32 (!%p142_p9), %s1153_s16, 10 }
  0x10   : > { %s164_s10 = scalar_lea.vmem (!%p142_p9), [#allocation2], %s906_s9  ;;  %s1226_s16 = scalar_lea.sflag (!%p142_p9), [#allocation3], %s162_s8 }
  0x11   : > { %s840_s17 = sshll.u32 (!%p142_p9), %s164_s10, 4  ;;  %s1109_s26 = smov (!%p142_p9), [#allocation2]   ;;  %s1222_s17 = int_to_ptr.vmem [resolvable:$true] %s840_s17 }
  0x12   : > { %s1047_s25 = scalar_lea.vmem (!%p142_p9), %s1222_s17, 1024 }
  0x13   : > { %v172_v0 = vld [vmem:[%s1267_s1] sm:$0xff]  ;;  %vm176_vm0 = vcmask 64512   ;;  %s1277_s24 = smov (!%p166_p10, %s907_s24), 7  ;;  %v173_v2 = vld [vmem:[%s1267_s1 + $0x8] sm:$0xff]  ;;  %vm339_vm1 = vcmask 130048   ;;  %p1048_p11 = scmp.ne.s32.totalorder %s1222_s17, %s1047_s25 }
  0x14   : > { %968 = vmatprep.mubr.msk.f32.mxu0 %vm176_vm0, %v172_v0  ;;  %s908_s27 = sshll.u32 %s1277_s24, 3  ;;  %v174_v6 = vld [vmem:[%s1268_s2] sm:$0xff]  ;;  %s1220_s24 = scalar_lea.hbm %s1269_s3, %s941_s11 }
  0x15   : > { %s169_s30 = scalar_lea.vmem %s1266_s0, %s908_s27  ;;  %971 = vmatprep.subr.mxu1 %v174_v6  ;;  %p1049_p12 = pnand %p1048_p11, %p1170_p5 }
  0x16   : > { %v175_v1 = vld [vmem:[%s169_s30] sm:$0xff]  ;;  %v913_v3 = vld [vmem:[%s169_s30 + $0x8] sm:$0xff]  ;;  %v920_v4 = vld [vmem:[%s169_s30 + $0x10] sm:$0xff]  ;;  %972 = vmatpush3.msra.mxu1 %v174_v6  ;;  %s1051_s27 = sshll.u32 %s1109_s26, 4  ;;  %s1052_s27 = int_to_ptr.vmem [resolvable:$false] %s1051_s27 }
  0x17   : > { %966 = vmatprep.subr.mxu0 %v175_v1  ;;  %v927_v5 = vld [vmem:[%s169_s30 + $0x18] sm:$0xff]  ;;  %981 = vmatprep.subr.mxu1 %v174_v6  ;;  %p1050_p13 = pneg %p1049_p12  ;;  %s1053_s28 = scalar_lea.vmem %s1052_s27, 2048 }
  0x18   : > { %967 = vmatpush3.msra.mxu0 %v175_v1  ;;  %p1054_p0 = scmp.lt.s32.totalorder %s1222_s17, %s1052_s27  ;;  %p1055_p1 = scmp.lt.s32.totalorder %s1053_s28, %s1047_s25 }
  0x19   : > { %969 = vmatmul.mubr.msk.f32.vlgmr.msra.gmra.mxu0 %vm176_vm0, %v173_v2  ;;  %976 = vmatprep.subr.mxu0 %v913_v3 }
  0x1a   : > { %977 = vmatpush3.msra.mxu0 %v913_v3  ;;  %978 = vmatprep.mubr.msk.f32.mxu0 %vm176_vm0, %v172_v0  ;;  %p1056_p2 = por %p1055_p1, %p1054_p0 }
  0x1b   : > { %986 = vmatprep.subr.mxu0 %v920_v4 }
  0x1c   : > { %p1057_p3 = pnand %p1056_p2, %p1050_p13 }
  0x1d   : > { %979 = vmatmul.mubr.msk.f32.vlgmr.msra.gmra.mxu0 %vm176_vm0, %v173_v2 }
  0x1e   : > { %987 = vmatpush3.msra.mxu0 %v920_v4  ;;  %988 = vmatprep.mubr.msk.f32.mxu0 %vm176_vm0, %v172_v0 }
  0x1f   : > { %996 = vmatprep.subr.mxu0 %v927_v5 }
  0x21   : > { %989 = vmatmul.mubr.msk.f32.vlgmr.msra.gmra.mxu0 %vm176_vm0, %v173_v2 }
  0x22   : > { %997 = vmatpush3.msra.mxu0 %v927_v5  ;;  %998 = vmatprep.mubr.msk.f32.mxu0 %vm176_vm0, %v172_v0 }
  0x25   : > { %999 = vmatmul.mubr.msk.f32.vlgmr.msra.gmra.mxu0 %vm176_vm0, %v173_v2 }
  0xd9   : > { %v970_v7 = vpop.f32.mrf.mxu0 }
  0xdb   : > { %v249_v8 = vpop.f32.mrf.mxu0 }
  0xdc   : > { %973 = vmatprep.mubr.msk.f32.mxu1 %vm176_vm0, %v249_v8 }
  0xdd   : > { %974 = vmatmul.mubr.msk.f32.vlgmr.msra.gmra.mxu1 %vm176_vm0, %v970_v7  ;;  %v980_v9 = vpop.f32.mrf.mxu0 }
  0xde   : > { %982 = vmatpush3.msra.mxu1 %v174_v6 }
  0xdf   : > { %v410_v10 = vpop.f32.mrf.mxu0  ;;  %991 = vmatprep.subr.mxu1 %v174_v6 }
  0xe0   : > { %983 = vmatprep.mubr.msk.f32.mxu1 %vm176_vm0, %v410_v10 }
  0xe1   : > { %984 = vmatmul.mubr.msk.f32.vlgmr.msra.gmra.mxu1 %vm176_vm0, %v980_v9  ;;  %v990_v11 = vpop.f32.mrf.mxu0 }
  0xe2   : > { %992 = vmatpush3.msra.mxu1 %v174_v6 }
  0xe3   : > { %v571_v12 = vpop.f32.mrf.mxu0  ;;  %1001 = vmatprep.subr.mxu1 %v174_v6 }
  0xe4   : > { %993 = vmatprep.mubr.msk.f32.mxu1 %vm176_vm0, %v571_v12 }
  0xe5   : > { %994 = vmatmul.mubr.msk.f32.vlgmr.msra.gmra.mxu1 %vm176_vm0, %v990_v11  ;;  %v1000_v13 = vpop.f32.mrf.mxu0 }
  0xe6   : > { %1002 = vmatpush3.msra.mxu1 %v174_v6 }
  0xe7   : > { %v732_v14 = vpop.f32.mrf.mxu0 }
  0xe8   : > { %1003 = vmatprep.mubr.msk.f32.mxu1 %vm176_vm0, %v732_v14 }
  0xe9   : > { %1004 = vmatmul.mubr.msk.f32.vlgmr.msra.gmra.mxu1 %vm176_vm0, %v1000_v13 }
 0x19d   : > { %v975_v15 = vpop.f32.mrf.mxu1 }
 0x19e   : > { %341 = vst.msk [vmem:[%s164_s10 + $0x8] sm:$0xff] %vm339_vm1, %v975_v15 }
 0x19f   : > { %v330_v16 = vpop.f32.mrf.mxu1 }
 0x1a0   : > { %340 = vst.msk [vmem:[%s164_s10] sm:$0xff] %vm339_vm1, %v330_v16 }
 0x1a1   : > { %v985_v17 = vpop.f32.mrf.mxu1 }
 0x1a2   : > { %919 = vst.msk [vmem:[%s164_s10 + $0x18] sm:$0xff] %vm339_vm1, %v985_v17 }
 0x1a3   : > { %v491_v18 = vpop.f32.mrf.mxu1 }
 0x1a4   : > { %918 = vst.msk [vmem:[%s164_s10 + $0x10] sm:$0xff] %vm339_vm1, %v491_v18 }
 0x1a5   : > { %v995_v19 = vpop.f32.mrf.mxu1 }
 0x1a6   : > { %926 = vst.msk [vmem:[%s164_s10 + $0x28] sm:$0xff] %vm339_vm1, %v995_v19 }
 0x1a7   : > { %v652_v20 = vpop.f32.mrf.mxu1 }
 0x1a8   : > { %925 = vst.msk [vmem:[%s164_s10 + $0x20] sm:$0xff] %vm339_vm1, %v652_v20 }
 0x1a9   : > { %v1005_v21 = vpop.f32.mrf.mxu1 }
 0x1aa   : > { %933 = vst.msk [vmem:[%s164_s10 + $0x38] sm:$0xff] %vm339_vm1, %v1005_v21 }
 0x1ab   : > { %v813_v22 = vpop.f32.mrf.mxu1 }
 0x1ac   : > { %932 = vst.msk [vmem:[%s164_s10 + $0x30] sm:$0xff] %vm339_vm1, %v813_v22 }
 0x1ad   : > { %1060 = shalt.err (!%p1057_p3)
}
 0x1ae   : > { %s1061_s29 = scalar_lea.hbm %s1220_s24, 1024  ;;  %s1065_s5 = scalar_lea.hbm %s1269_s3, 2048 }
 0x1af   : > { %p1062_p4 = scmp.ne.s32.totalorder %s1220_s24, %s1061_s29  ;;  %p1066_p9 = scmp.lt.s32.totalorder %s1220_s24, %s1269_s3 }
 0x1b0   : > { %p1067_p10 = scmp.lt.s32.totalorder %s1065_s5, %s1061_s29 }
 0x1b1   : > { %p1063_p7 = pnand %p1062_p4, %p1170_p5 }
 0x1b2   : > { %p1068_p11 = por %p1067_p10, %p1066_p9 }
 0x1b3   : > { %p1064_p8 = pneg %p1063_p7 }
 0x1b5   : > { %p1069_p12 = pnand %p1068_p11, %p1064_p8 }
 0x1b7   : > { %1072 = shalt.err (!%p1069_p12)
}
 0x1b8   : > { %s1110_s8 = smov 128   ;;  %s1111_s9 = smov 8  }
 0x1b9   : > { %1006 = dma.vmem_to_hbm [thread:$0]  (%p1170_p5), %s1222_s17, 1024, %s1220_s24, %s1226_s16, %s1110_s8, %s1110_s8, %s1111_s9  }
 0x1ba PF: > { %p1012_p13 = scmp.ge.s32.totalorder %s1107_s15, 2  ;;  %s855_s10 = sand.u32 1, %s1095_s12  }
 0x1bb   : > { %s856_s11 = scalar_lea.sflag [#allocation3], %s855_s10 }
 0x1bc   : > { %p1009_p0 = pnand %p1012_p13, %p1174_p6 }
 0x1be   : > { %p1010_p1 = pneg %p1009_p0 }
 0x1c0   : > { %1090 = dma.done.wait (%p1010_p1), %s856_s11, 1024  }
 0x1c1   : > { %1092 = vsyncadd (%p1010_p1), %s856_s11, 4294966272  ;;  %p13_p2 = scmp.ge.s32.totalorder %s1157_s18, 4   ;;  %s1272_s12 = smov %s1099_s13 }
 0x1c2   : > { %s1273_s13 = smov %s1103_s14  ;;  %s1274_s14 = smov %s1168_s21 }
 0x1c3   : > { %s1275_s15 = smov %s1157_s18  ;;  %15 = sbr.rel (!%p13_p2) target bundleno = 3 (0x3), region = 73 }
 0x1c8   :  { %861 = vsyncpa [#allocation3], 1 }
 0x1c9   :  { %863 = vsyncpa [#allocation3 + $0x1], 1 }

</bundles_post_ra>
